<compile_context>
chip_gen: v7x
topology: tpu7x:2x2x1
jax: 0.10.0
libtpu: 0.0.40
codegen_flags: <defaults>
</compile_context>

<pallas_src>
import functools

import numpy as np
import jax
import jax.numpy as jnp
from jax.experimental import pallas as pl
from jax.experimental.pallas import tpu as pltpu

_INT32_MAX = np.int32(np.iinfo(np.int32).max)


def _round_up(a, b):
    return (a + b - 1) // b * b


def _easy_peasy_kernel(xrow_ref, xcolT_ref, rownorm_ref, colnorm_ref,
                       laba_ref, labc_ref, negidx_ref, *,
                       tm, tn, num_neg, cutoff_sq, infinity, idx_bits,
                       eps, use_bf16):
    i = pl.program_id(0)                       # anchor-row tile   ('parallel')
    j = pl.program_id(1)                       # candidate tile    ('arbitrary')

    xr = xrow_ref[...]                         # (TM, Dp) anchors
    xc = xcolT_ref[...]                        # (Dp, TN) candidates, pre-transposed

    if use_bf16:                               # optional bf16 MXU path
        prod = jnp.dot(xr.astype(jnp.bfloat16), xc.astype(jnp.bfloat16),
                       preferred_element_type=jnp.float32)
    else:
        prod = jnp.dot(xr, xc, preferred_element_type=jnp.float32)   # (TM, TN)

    # Squared pdist with the reference eps clamp folded in (sqrt skipped --
    # monotone, cutoff compared as cutoff**2, mask groups unaffected for d<1e3).
    rn = rownorm_ref[...]                      # (TM, 1)  anchor |x|^2
    cn = colnorm_ref[...]                      # (1, TN)  candidate |x|^2; pad = 1e30
    dsq = jnp.maximum(rn + cn - 2.0 * prod, eps)

    # diagonal / same-label masking from (TM,1) x (1,TN) iotas only
    row_id = jax.lax.broadcasted_iota(jnp.int32, (tm, 1), 0) + i * tm
    col_id = jax.lax.broadcasted_iota(jnp.int32, (1, tn), 1) + j * tn
    pos = jnp.logical_and(laba_ref[...] == labc_ref[...], row_id != col_id)

    # reference: d + infinity * ((pos > 0) + (d < cutoff))    (0/1/2 mask)
    mask = pos.astype(jnp.float32) + (dsq < cutoff_sq).astype(jnp.float32)
    masked = dsq + infinity * mask             # non-negative f32

    # Pack (value, global column index) into one int32 key: low idx_bits of the
    # value bits are replaced by the column index, so a single min yields value
    # AND index with lowest-index tie-break for free.
    low_mask = (1 << idx_bits) - 1
    vbits = pltpu.bitcast(masked, jnp.int32)
    keys = jnp.bitwise_or(jnp.bitwise_and(vbits, np.int32(~low_mask)), col_id)

    # The running top-K keys live in the revisited output block (accumulator).
    @pl.when(j == 0)
    def _():
        negidx_ref[...] = jnp.full((tm, num_neg), _INT32_MAX, jnp.int32)

    wold = negidx_ref[...]                     # (TM, K) best keys so far
    wtile = keys                               # (TM, TN) this tile's keys
    for k in range(num_neg):                   # K is static & small
        t_min = jnp.min(wtile, axis=1, keepdims=True)   # one lane-reduce over TN
        o_min = jnp.min(wold, axis=1, keepdims=True)    # tiny reduce over K
        sel = jnp.minimum(t_min, o_min)                 # global indices make keys unique
        negidx_ref[:, k:k + 1] = sel                    # direct per-k store
        wtile = jnp.where(wtile == sel, _INT32_MAX, wtile)
        wold = jnp.where(wold == sel, _INT32_MAX, wold)

    # Last candidate tile: strip value bits, keep the global column indices.
    @pl.when(j == pl.num_programs(1) - 1)
    def _():
        negidx_ref[...] = jnp.bitwise_and(negidx_ref[...], np.int32(low_mask))


def _select_negatives(x, labels, num_neg, *, cutoff, infinity, eps,
                      use_bf16=False, tile_m=None, tile_n=None):
    """(N, K) int32 indices of the num_neg closest 'valid' negatives per anchor."""
    N, D = x.shape
    K = int(num_neg)

    # ---- tiling ------------------------------------------------------------
    if tile_m is not None:
        TM = int(tile_m)
    else:
        TM = 128 if N > 128 else max(8, _round_up(N, 8))
        # TODO(synk): TM=256 fills the v6e 256-wide MXU better; keep 128 on v5e/v7x.
    if tile_n is not None:
        TN = int(tile_n)
    elif N <= 512:
        TN = _round_up(N, TM)          # single candidate tile
    else:
        TN = 512                       # streamed; (TM,TN) temporaries stay VMEM-bounded
    if TN % TM != 0:
        TN = _round_up(TN, TM)
    Np = _round_up(N, TN)
    assert Np % TM == 0 and Np % TN == 0
    assert TN == Np or TN % 128 == 0, "candidate tile must be lane-aligned"
    Dp = _round_up(D, 128)
    idx_bits = max(1, int(Np - 1).bit_length())

    xf = jnp.zeros((Np, Dp), jnp.float32).at[:N, :D].set(x.astype(jnp.float32))
    xfT = xf.T                                          # (Dp, Np) pre-transposed MXU RHS
    norms = jnp.sum(xf * xf, axis=1)                    # (Np,)
    rownorm = norms.reshape(Np, 1)
    # fold padded-column exclusion into the data (no in-kernel col_id < N select)
    colnorm = jnp.where(jnp.arange(Np) < N, norms, jnp.float32(1e30)).reshape(1, Np)
    labf = jnp.full((Np,), np.iinfo(np.int32).min, jnp.int32).at[:N].set(
        labels.astype(jnp.int32))
    lab_a = labf.reshape(Np, 1)
    lab_c = labf.reshape(1, Np)

    kernel = functools.partial(
        _easy_peasy_kernel, tm=TM, tn=TN, num_neg=K,
        cutoff_sq=float(cutoff) ** 2, infinity=float(infinity),
        idx_bits=idx_bits, eps=float(eps), use_bf16=use_bf16)

    neg_idx = pl.pallas_call(
        kernel,
        out_shape=jax.ShapeDtypeStruct((Np, K), jnp.int32),
        grid=(Np // TM, Np // TN),
        in_specs=[
            pl.BlockSpec((TM, Dp), lambda i, j: (i, 0)),   # anchor rows
            pl.BlockSpec((Dp, TN), lambda i, j: (0, j)),   # candidates (x^T), streamed
            pl.BlockSpec((TM, 1), lambda i, j: (i, 0)),    # anchor |x|^2
            pl.BlockSpec((1, TN), lambda i, j: (0, j)),    # candidate |x|^2 (+pad)
            pl.BlockSpec((TM, 1), lambda i, j: (i, 0)),    # anchor labels
            pl.BlockSpec((1, TN), lambda i, j: (0, j)),    # candidate labels
        ],
        # Output block index is constant along j -> stays VMEM-resident as the
        # online top-K accumulator; only (N, K) int32 ever goes back to HBM.
        out_specs=pl.BlockSpec((TM, K), lambda i, j: (i, 0)),
        compiler_params=pltpu.CompilerParams(
            dimension_semantics=("parallel", "arbitrary")),
    )(xf, xfT, rownorm, colnorm, lab_a, lab_c)
    return neg_idx[:N]


def easy_peasy_pairs_sampler(x, labels, *, cutoff=0.5, infinity=1e6, eps=1e-4,
                             one_triplet_per_sample=False, use_bf16_matmul=False,
                             tile_m=None, tile_n=None):
    """Mirrors EasyPeasyPairsSampler.forward (one_triplet_per_sample=False)."""
    # TODO(synk): one_triplet_per_sample=True (np.random.choice host RNG) not implemented.
    assert not one_triplet_per_sample
    N = x.shape[0]
    labels_np = np.asarray(labels)
    arange_n = np.arange(N)

    # num_neg / K are static kernel params; the torch reference itself syncs
    # int(pos.sum()) to the host, so this host step is inherent to the module.
    pos_mat = (labels_np[:, None] == labels_np[None, :]) & \
              (arange_n[:, None] != arange_n[None, :])
    n_pos = pos_mat.sum(axis=1)
    num_neg = max(1, int(n_pos.sum()) // N)
    K = max(1, min(num_neg, N))                           # topk_mask's K clamp

    neg_idx = np.asarray(_select_negatives(
        x, labels, K, cutoff=cutoff, infinity=infinity, eps=eps,
        use_bf16=use_bf16_matmul, tile_m=tile_m, tile_n=tile_n))

    # Vectorized replay of the reference's per-row list building / truncation.
    m = np.minimum(n_pos, K)                              # triplets per anchor
    a_idx = np.repeat(arange_n, m)
    rank = np.cumsum(pos_mat, axis=1) - 1
    p_idx = np.nonzero(pos_mat & (rank < m[:, None]))[1]  # first m_i positives, ascending
    neg_sorted = np.sort(neg_idx, axis=1)                 # nonzero() order is ascending
    n_idx = neg_sorted[np.arange(K)[None, :] < m[:, None]]

    a = jnp.asarray(a_idx.astype(np.int32))
    p = jnp.asarray(p_idx.astype(np.int32))
    n = jnp.asarray(n_idx.astype(np.int32))
    return a_idx.tolist(), x[a], x[p], x[n]


def _numpy_reference(x_np, labels_np, *, cutoff=0.5, infinity=1e6, eps=1e-4):
    """Replays the PyTorch forward (one_triplet_per_sample=False) in numpy/f32."""
    x_np = x_np.astype(np.float32)
    N = x_np.shape[0]
    prod = x_np @ x_np.T
    norm = np.diag(prod)[:, None]
    res = np.clip(norm + norm.T - 2.0 * prod, 0.0, None)
    d = np.sqrt(np.clip(res, eps, None)).astype(np.float32)
    pos = (labels_np[:, None] == labels_np[None, :]).astype(np.float32) \
        - np.eye(N, dtype=np.float32)
    num_neg = max(1, int(pos.sum()) // N)
    K = max(1, min(num_neg, N))
    masked = d + np.float32(infinity) * ((pos > 0).astype(np.float32)
                                         + (d < cutoff).astype(np.float32))
    neg = np.zeros_like(d)
    for i in range(N):
        idx = np.argsort(masked[i], kind="stable")[:K]    # topk(largest=False)
        neg[i, idx] = 1.0
    a_idx, p_idx, n_idx = [], [], []
    for i in range(N):
        cur_posits = np.where(pos[i] > 0)[0]
        cur_negs = np.where(neg[i] > 0)[0]
        if len(cur_negs) != len(cur_posits):
            ml = min(len(cur_posits), len(cur_negs))
            cur_posits = cur_posits[:ml]
            cur_negs = cur_negs[:ml]
        p_idx.extend(cur_posits.tolist())
        n_idx.extend(cur_negs.tolist())
        a_idx.extend([i] * len(cur_posits))
    return a_idx, p_idx, n_idx


if __name__ == "__main__":
    key = jax.random.PRNGKey(0)
    k1, k2 = jax.random.split(key)

    def check(x, labels, **kw):
        a_idx, xa, xp_, xn = easy_peasy_pairs_sampler(x, labels, **kw)
        jax.block_until_ready((xa, xp_, xn))
        x_np = np.asarray(x)
        lab_np = np.asarray(labels)
        a_ref, p_ref, n_ref = _numpy_reference(x_np, lab_np)
        assert list(a_idx) == list(a_ref), (a_idx[:8], a_ref[:8])
        assert np.array_equal(np.asarray(xa), x_np[np.asarray(a_ref, dtype=np.int64)])
        assert np.array_equal(np.asarray(xp_), x_np[np.asarray(p_ref, dtype=np.int64)])
        assert np.array_equal(np.asarray(xn), x_np[np.asarray(n_ref, dtype=np.int64)])
        assert xa.shape == xp_.shape == xn.shape

    # Tiny batch: single (row, column) tile; unbalanced classes exercise both
    # truncation branches of the reference loop.
    N1, D1 = 16, 32
    x1 = jax.random.normal(k1, (N1, D1), dtype=jnp.float32)
    lab1 = jnp.array([0] * 5 + [1] * 5 + [2] * 3 + [3] * 3, dtype=jnp.int32)
    check(x1, lab1)

    # Multi-tile: 2 anchor-row tiles x 2 streamed candidate tiles (+ padding);
    # exercises the online top-K merge across column tiles.
    N2, D2 = 144, 24
    x2 = jax.random.normal(k2, (N2, D2), dtype=jnp.float32)
    lab2 = jnp.asarray(np.arange(N2) // 4, dtype=jnp.int32)    # 36 classes of 4 -> K=3
    check(x2, lab2, tile_n=128)

    print("KERNEL_OK")
</pallas_src>

<mosaic_0001>
module attributes {stable_mosaic.version = 11 : i64} {
  func.func @_easy_peasy_kernel(%arg0: i32, %arg1: i32, %arg2: memref<16x128xf32, #tpu.memory_space<vmem>>, %arg3: memref<128x16xf32, #tpu.memory_space<vmem>>, %arg4: memref<16x1xf32, #tpu.memory_space<vmem>>, %arg5: memref<1x16xf32, #tpu.memory_space<vmem>>, %arg6: memref<16x1xi32, #tpu.memory_space<vmem>>, %arg7: memref<1x16xi32, #tpu.memory_space<vmem>>, %arg8: memref<16x3xi32, #tpu.memory_space<vmem>>) attributes {dimension_semantics = [#tpu.dimension_semantics<parallel>, #tpu.dimension_semantics<arbitrary>], iteration_bounds = array<i64: 1, 1>, scalar_prefetch = 0 : i64, scratch_operands = 0 : i64, tpu.core_type = #tpu.core_type<tc>, window_params = [{transform_indices = @transform_0, window_bounds = array<i64: 16, 128>}, {transform_indices = @transform_1, window_bounds = array<i64: 128, 16>}, {transform_indices = @transform_2, window_bounds = array<i64: 16, 1>}, {transform_indices = @transform_3, window_bounds = array<i64: 1, 16>}, {transform_indices = @transform_4, window_bounds = array<i64: 16, 1>}, {transform_indices = @transform_5, window_bounds = array<i64: 1, 16>}, {transform_indices = @transform_6, window_bounds = array<i64: 16, 3>}]} {
    %c0 = arith.constant 0 : index
    %c0_0 = arith.constant 0 : index
    %0 = vector.load %arg2[%c0, %c0_0] : memref<16x128xf32, #tpu.memory_space<vmem>>, vector<16x128xf32>
    %c0_1 = arith.constant 0 : index
    %c0_2 = arith.constant 0 : index
    %1 = vector.load %arg3[%c0_1, %c0_2] : memref<128x16xf32, #tpu.memory_space<vmem>>, vector<128x16xf32>
    %cst = arith.constant dense<0.000000e+00> : vector<16x16xf32>
    %2 = tpu.matmul %0, %1, %cst {dimension_numbers = #tpu.dot_dimension_numbers<[1], [0], [0], [1], [0, 0, 1, 1], [], []>} : vector<16x128xf32>, vector<128x16xf32>, vector<16x16xf32> -> vector<16x16xf32>
    %c0_3 = arith.constant 0 : index
    %c0_4 = arith.constant 0 : index
    %3 = vector.load %arg4[%c0_3, %c0_4] : memref<16x1xf32, #tpu.memory_space<vmem>>, vector<16x1xf32>
    %c0_5 = arith.constant 0 : index
    %c0_6 = arith.constant 0 : index
    %4 = vector.load %arg5[%c0_5, %c0_6] : memref<1x16xf32, #tpu.memory_space<vmem>>, vector<1x16xf32>
    %5 = vector.broadcast %3 : vector<16x1xf32> to vector<16x16xf32>
    %6 = vector.broadcast %4 : vector<1x16xf32> to vector<16x16xf32>
    %7 = arith.addf %5, %6 : vector<16x16xf32>
    %cst_7 = arith.constant 2.000000e+00 : f32
    %8 = vector.broadcast %cst_7 : f32 to vector<16x16xf32>
    %9 = arith.mulf %8, %2 : vector<16x16xf32>
    %10 = arith.subf %7, %9 : vector<16x16xf32>
    %cst_8 = arith.constant 9.99999974E-5 : f32
    %11 = vector.broadcast %cst_8 : f32 to vector<16x16xf32>
    %12 = arith.maximumf %10, %11 : vector<16x16xf32>
    %13 = tpu.iota {dimensions = array<i32: 0>} : vector<16x1xi32>
    %c16_i32 = arith.constant 16 : i32
    %14 = arith.muli %arg0, %c16_i32 : i32
    %15 = vector.broadcast %14 : i32 to vector<16x1xi32>
    %16 = arith.addi %13, %15 : vector<16x1xi32>
    %17 = tpu.iota {dimensions = array<i32: 1>} : vector<1x16xi32>
    %c16_i32_9 = arith.constant 16 : i32
    %18 = arith.muli %arg1, %c16_i32_9 : i32
    %19 = vector.broadcast %18 : i32 to vector<1x16xi32>
    %20 = arith.addi %17, %19 : vector<1x16xi32>
    %c0_10 = arith.constant 0 : index
    %c0_11 = arith.constant 0 : index
    %21 = vector.load %arg6[%c0_10, %c0_11] : memref<16x1xi32, #tpu.memory_space<vmem>>, vector<16x1xi32>
    %c0_12 = arith.constant 0 : index
    %c0_13 = arith.constant 0 : index
    %22 = vector.load %arg7[%c0_12, %c0_13] : memref<1x16xi32, #tpu.memory_space<vmem>>, vector<1x16xi32>
    %23 = vector.broadcast %21 : vector<16x1xi32> to vector<16x16xi32>
    %24 = vector.broadcast %22 : vector<1x16xi32> to vector<16x16xi32>
    %25 = arith.cmpi eq, %23, %24 : vector<16x16xi32>
    %26 = vector.broadcast %16 : vector<16x1xi32> to vector<16x16xi32>
    %27 = vector.broadcast %20 : vector<1x16xi32> to vector<16x16xi32>
    %28 = arith.cmpi ne, %26, %27 : vector<16x16xi32>
    %29 = arith.andi %25, %28 : vector<16x16xi1>
    %30 = arith.extui %29 : vector<16x16xi1> to vector<16x16xi32>
    %31 = arith.sitofp %30 : vector<16x16xi32> to vector<16x16xf32>
    %cst_14 = arith.constant 2.500000e-01 : f32
    %32 = vector.broadcast %cst_14 : f32 to vector<16x16xf32>
    %33 = arith.cmpf olt, %12, %32 : vector<16x16xf32>
    %34 = arith.extui %33 : vector<16x16xi1> to vector<16x16xi32>
    %35 = arith.sitofp %34 : vector<16x16xi32> to vector<16x16xf32>
    %36 = arith.addf %31, %35 : vector<16x16xf32>
    %cst_15 = arith.constant 1.000000e+06 : f32
    %37 = vector.broadcast %cst_15 : f32 to vector<16x16xf32>
    %38 = arith.mulf %37, %36 : vector<16x16xf32>
    %39 = arith.addf %12, %38 : vector<16x16xf32>
    %40 = tpu.bitcast %39 : vector<16x16xf32> -> vector<16x16xi32>
    %c-16_i32 = arith.constant -16 : i32
    %41 = vector.broadcast %c-16_i32 : i32 to vector<16x16xi32>
    %42 = arith.andi %40, %41 : vector<16x16xi32>
    %43 = vector.broadcast %20 : vector<1x16xi32> to vector<16x16xi32>
    %44 = arith.ori %42, %43 : vector<16x16xi32>
    %c0_i32 = arith.constant 0 : i32
    %45 = arith.cmpi eq, %arg1, %c0_i32 : i32
    %46 = arith.extui %45 : i1 to i32
    %c0_i32_16 = arith.constant 0 : i32
    %47 = arith.cmpi ne, %46, %c0_i32_16 : i32
    scf.if %47 {
      %c2147483647_i32_34 = arith.constant 2147483647 : i32
      %86 = vector.broadcast %c2147483647_i32_34 : i32 to vector<16x3xi32>
      %c0_35 = arith.constant 0 : index
      %c0_36 = arith.constant 0 : index
      %87 = vector.load %arg8[%c0_35, %c0_36] : memref<16x3xi32, #tpu.memory_space<vmem>>, vector<16x3xi32>
      tpu.vector_store %arg8[%c0_35, %c0_36], %86 {strides = array<i32>} : memref<16x3xi32, #tpu.memory_space<vmem>>, vector<16x3xi32>,
    } else {
    }
    %c0_17 = arith.constant 0 : index
    %c0_18 = arith.constant 0 : index
    %48 = vector.load %arg8[%c0_17, %c0_18] : memref<16x3xi32, #tpu.memory_space<vmem>>, vector<16x3xi32>
    %cst_19 = arith.constant dense<2147483647> : vector<16xi32>
    %49 = vector.multi_reduction <minsi>, %44, %cst_19 [1] : vector<16x16xi32> to vector<16xi32>
    %50 = vector.shape_cast %49 : vector<16xi32> to vector<16x1xi32>
    %cst_20 = arith.constant dense<2147483647> : vector<16xi32>
    %51 = vector.multi_reduction <minsi>, %48, %cst_20 [1] : vector<16x3xi32> to vector<16xi32>
    %52 = vector.shape_cast %51 : vector<16xi32> to vector<16x1xi32>
    %53 = arith.minsi %50, %52 : vector<16x1xi32>
    %c0_21 = arith.constant 0 : index
    %c0_22 = arith.constant 0 : index
    %54 = vector.load %arg8[%c0_21, %c0_22] : memref<16x3xi32, #tpu.memory_space<vmem>>, vector<16x1xi32>
    tpu.vector_store %arg8[%c0_21, %c0_22], %53 {strides = array<i32>} : memref<16x3xi32, #tpu.memory_space<vmem>>, vector<16x1xi32>,
    %55 = vector.broadcast %53 : vector<16x1xi32> to vector<16x16xi32>
    %56 = arith.cmpi eq, %44, %55 : vector<16x16xi32>
    %c2147483647_i32 = arith.constant 2147483647 : i32
    %57 = vector.broadcast %c2147483647_i32 : i32 to vector<16x16xi32>
    %58 = arith.select %56, %57, %44 : vector<16x16xi1>, vector<16x16xi32>
    %59 = vector.broadcast %53 : vector<16x1xi32> to vector<16x3xi32>
    %60 = arith.cmpi eq, %48, %59 : vector<16x3xi32>
    %c2147483647_i32_23 = arith.constant 2147483647 : i32
    %61 = vector.broadcast %c2147483647_i32_23 : i32 to vector<16x3xi32>
    %62 = arith.select %60, %61, %48 : vector<16x3xi1>, vector<16x3xi32>
    %cst_24 = arith.constant dense<2147483647> : vector<16xi32>
    %63 = vector.multi_reduction <minsi>, %58, %cst_24 [1] : vector<16x16xi32> to vector<16xi32>
    %64 = vector.shape_cast %63 : vector<16xi32> to vector<16x1xi32>
    %cst_25 = arith.constant dense<2147483647> : vector<16xi32>
    %65 = vector.multi_reduction <minsi>, %62, %cst_25 [1] : vector<16x3xi32> to vector<16xi32>
    %66 = vector.shape_cast %65 : vector<16xi32> to vector<16x1xi32>
    %67 = arith.minsi %64, %66 : vector<16x1xi32>
    %c0_26 = arith.constant 0 : index
    %c1 = arith.constant 1 : index
    %68 = vector.load %arg8[%c0_26, %c1] : memref<16x3xi32, #tpu.memory_space<vmem>>, vector<16x1xi32>
    tpu.vector_store %arg8[%c0_26, %c1], %67 {strides = array<i32>} : memref<16x3xi32, #tpu.memory_space<vmem>>, vector<16x1xi32>,
    %69 = vector.broadcast %67 : vector<16x1xi32> to vector<16x16xi32>
    %70 = arith.cmpi eq, %58, %69 : vector<16x16xi32>
    %c2147483647_i32_27 = arith.constant 2147483647 : i32
    %71 = vector.broadcast %c2147483647_i32_27 : i32 to vector<16x16xi32>
    %72 = arith.select %70, %71, %58 : vector<16x16xi1>, vector<16x16xi32>
    %73 = vector.broadcast %67 : vector<16x1xi32> to vector<16x3xi32>
    %74 = arith.cmpi eq, %62, %73 : vector<16x3xi32>
    %c2147483647_i32_28 = arith.constant 2147483647 : i32
    %75 = vector.broadcast %c2147483647_i32_28 : i32 to vector<16x3xi32>
    %76 = arith.select %74, %75, %62 : vector<16x3xi1>, vector<16x3xi32>
    %cst_29 = arith.constant dense<2147483647> : vector<16xi32>
    %77 = vector.multi_reduction <minsi>, %72, %cst_29 [1] : vector<16x16xi32> to vector<16xi32>
    %78 = vector.shape_cast %77 : vector<16xi32> to vector<16x1xi32>
    %cst_30 = arith.constant dense<2147483647> : vector<16xi32>
    %79 = vector.multi_reduction <minsi>, %76, %cst_30 [1] : vector<16x3xi32> to vector<16xi32>
    %80 = vector.shape_cast %79 : vector<16xi32> to vector<16x1xi32>
    %81 = arith.minsi %78, %80 : vector<16x1xi32>
    %c0_31 = arith.constant 0 : index
    %c2 = arith.constant 2 : index
    %82 = vector.load %arg8[%c0_31, %c2] : memref<16x3xi32, #tpu.memory_space<vmem>>, vector<16x1xi32>
    tpu.vector_store %arg8[%c0_31, %c2], %81 {strides = array<i32>} : memref<16x3xi32, #tpu.memory_space<vmem>>, vector<16x1xi32>,
    %c0_i32_32 = arith.constant 0 : i32
    %83 = arith.cmpi eq, %arg1, %c0_i32_32 : i32
    %84 = arith.extui %83 : i1 to i32
    %c0_i32_33 = arith.constant 0 : i32
    %85 = arith.cmpi ne, %84, %c0_i32_33 : i32
    scf.if %85 {
      %c0_34 = arith.constant 0 : index
      %c0_35 = arith.constant 0 : index
      %86 = vector.load %arg8[%c0_34, %c0_35] : memref<16x3xi32, #tpu.memory_space<vmem>>, vector<16x3xi32>
      %c15_i32 = arith.constant 15 : i32
      %87 = vector.broadcast %c15_i32 : i32 to vector<16x3xi32>
      %88 = arith.andi %86, %87 : vector<16x3xi32>
      %c0_36 = arith.constant 0 : index
      %c0_37 = arith.constant 0 : index
      %89 = vector.load %arg8[%c0_36, %c0_37] : memref<16x3xi32, #tpu.memory_space<vmem>>, vector<16x3xi32>
      tpu.vector_store %arg8[%c0_36, %c0_37], %88 {strides = array<i32>} : memref<16x3xi32, #tpu.memory_space<vmem>>, vector<16x3xi32>,
    } else {
    }
    return
  }
  func.func @transform_0(%arg0: i32, %arg1: i32) -> (i32, i32) {
    %c0_i32 = arith.constant 0 : i32
    %c0_i32_0 = arith.constant 0 : i32
    return %arg0, %c0_i32 : i32, i32
  }
  func.func @transform_1(%arg0: i32, %arg1: i32) -> (i32, i32) {
    %c0_i32 = arith.constant 0 : i32
    %c0_i32_0 = arith.constant 0 : i32
    return %c0_i32, %arg1 : i32, i32
  }
  func.func @transform_2(%arg0: i32, %arg1: i32) -> (i32, i32) {
    %c0_i32 = arith.constant 0 : i32
    %c0_i32_0 = arith.constant 0 : i32
    return %arg0, %c0_i32 : i32, i32
  }
  func.func @transform_3(%arg0: i32, %arg1: i32) -> (i32, i32) {
    %c0_i32 = arith.constant 0 : i32
    %c0_i32_0 = arith.constant 0 : i32
    return %c0_i32, %arg1 : i32, i32
  }
  func.func @transform_4(%arg0: i32, %arg1: i32) -> (i32, i32) {
    %c0_i32 = arith.constant 0 : i32
    %c0_i32_0 = arith.constant 0 : i32
    return %arg0, %c0_i32 : i32, i32
  }
  func.func @transform_5(%arg0: i32, %arg1: i32) -> (i32, i32) {
    %c0_i32 = arith.constant 0 : i32
    %c0_i32_0 = arith.constant 0 : i32
    return %c0_i32, %arg1 : i32, i32
  }
  func.func @transform_6(%arg0: i32, %arg1: i32) -> (i32, i32) {
    %c0_i32 = arith.constant 0 : i32
    %c0_i32_0 = arith.constant 0 : i32
    return %arg0, %c0_i32 : i32, i32
  }
}

</mosaic_0001>

<bundles_post_ra>
// kernel: tpu_custom_call.1
= control target key start
LH: loop header
LB: loop body
LE: loop exit
PB: predicated region body
PF: predicated region fallthrough
CT: control target
= control target key end

     0   :  { %v533_v3 = vmov 0   ;;  %vm200_vm0 = vcmask 23552   ;;  %v534_v31 = vmov 2147483647   ;;  %v143_v36 = vlaneseq  ;;  %s749_s1 = inlined_call_operand.vmem [shape: f32[128,16], index: 1, kind: input, shape index: {}]   ;;  %s750_s0 = inlined_call_operand.vmem [shape: f32[16,128], index: 0, kind: input, shape index: {}]   ;;  %s751_s2 = inlined_call_operand.vmem [shape: f32[16,1], index: 2, kind: input, shape index: {}]   ;;  %s752_s4 = inlined_call_operand.vmem [shape: s32[16,1], index: 4, kind: input, shape index: {}]   ;;  %s753_s6 = inlined_call_operand.vmem [shape: s32[16,3], index: 6, kind: output, shape index: {}]   ;;  %s754_s3 = inlined_call_operand.vmem [shape: f32[1,16], index: 3, kind: input, shape index: {}]   ;;  %s755_s5 = inlined_call_operand.vmem [shape: s32[1,16], index: 5, kind: input, shape index: {}]  }
   0x1   :  { %v25_v0 = vld [vmem:[%s749_s1] sm:$0xff]  ;;  %v26_v1 = vld [vmem:[%s749_s1 + $0x8] sm:$0xff]  ;;  %v27_v2 = vld [vmem:[%s749_s1 + $0x10] sm:$0xff]  ;;  %531 = vset.pattern.permute.xlu0 %v533_v3  ;;  %532 = vset.pattern.permute.xlu1 %v533_v3  ;;  %201 = vst.msk [vmem:[%s753_s6] sm:$0xff] %vm200_vm0, %v534_v31  ;;  %v535_v56 = vmov 0.0   ;;  %vm205_vm9 = vcmask 130048  }
   0x2   :  { %v496_v4 = vpack.c.bf16 %v26_v1, %v25_v0  ;;  %v28_v5 = vld [vmem:[%s749_s1 + $0x18] sm:$0xff]  ;;  %v29_v7 = vld [vmem:[%s749_s1 + $0x20] sm:$0xff]  ;;  %v30_v8 = vld [vmem:[%s749_s1 + $0x28] sm:$0xff]  ;;  %202 = vst.msk [vmem:[%s753_s6 + $0x8] sm:$0xff] %vm200_vm0, %v534_v31  ;;  %v144_v39 = vshrl.u32 %v143_v36, 7  ;;  %v151_v42 = vand.u32 127, %v143_v36 }
   0x3   :  { %v500_v6 = vpack.c.bf16 %v28_v5, %v27_v2  ;;  %v504_v9 = vpack.c.bf16 %v30_v8, %v29_v7  ;;  %v31_v10 = vld [vmem:[%s749_s1 + $0x30] sm:$0xff]  ;;  %v23_v11 = vld [vmem:[%s750_s0] sm:$0xff]  ;;  %v32_v12 = vld [vmem:[%s749_s1 + $0x38] sm:$0xff]  ;;  %vm271_vm14 = vcmask 7168  }
   0x4   :  { %497 = vmatprep.subr.bf16.mxu0 %v496_v4  ;;  %493 = vmatprep.mubr.f32.mxu0 %v23_v11  ;;  %v116_v13 = vld [vmem:[%s751_s2] sm:$0xff]  ;;  %v117_v15 = vld [vmem:[%s751_s2 + $0x8] sm:$0xff]  ;;  %v508_v17 = vpack.c.bf16 %v32_v12, %v31_v10  ;;  %v35_v21 = vld [vmem:[%s749_s1 + $0x50] sm:$0xff]  ;;  %v145_v43 = vadd.s32 8, %v144_v39  ;;  %vm170_vm3 = vcmp.ne.s32.totalorder %v144_v39, %v151_v42 }
   0x5   :  { %499 = vmatpush3.bf16.msra.mxu0 %v496_v4  ;;  %v155_v14 = vld [vmem:[%s752_s4] sm:$0xff]  ;;  %121 = vperm.xlu0 %531, %v116_v13   ;;  %v156_v16 = vld [vmem:[%s752_s4 + $0x8] sm:$0xff]  ;;  %v36_v22 = vld [vmem:[%s749_s1 + $0x58] sm:$0xff] }
   0x6   :  { %501 = vmatprep.subr.bf16.mxu0 %v500_v6  ;;  %159 = vperm.xlu1 %532, %v155_v14   ;;  %v33_v18 = vld [vmem:[%s749_s1 + $0x40] sm:$0xff]  ;;  %v34_v19 = vld [vmem:[%s749_s1 + $0x48] sm:$0xff]  ;;  %v516_v23 = vpack.c.bf16 %v36_v22, %v35_v21  ;;  %v39_v27 = vld [vmem:[%s749_s1 + $0x70] sm:$0xff]  ;;  %vm171_vm1 = vcmp.ne.s32.totalorder %v145_v43, %v151_v42 }
   0x7   :  { %v512_v20 = vpack.c.bf16 %v34_v19, %v33_v18  ;;  %v37_v24 = vld [vmem:[%s749_s1 + $0x60] sm:$0xff]  ;;  %v38_v25 = vld [vmem:[%s749_s1 + $0x68] sm:$0xff]  ;;  %v40_v28 = vld [vmem:[%s749_s1 + $0x78] sm:$0xff] }
   0x8   :  { %v520_v26 = vpack.c.bf16 %v38_v25, %v37_v24  ;;  %v524_v29 = vpack.c.bf16 %v40_v28, %v39_v27  ;;  %v24_v30 = vld [vmem:[%s750_s0 + $0x8] sm:$0xff]  ;;  %v648_v32 = vld [vmem:[%s753_s6] sm:$0xff] }
   0x9   :  { %503 = vmatpush3.bf16.msra.mxu0 %v500_v6  ;;  %126 = vperm.xlu0 %531, %v117_v15   ;;  %v652_v33 = vsel %vm200_vm0, %v648_v32, 2147483647  ;;  %v437_v40 = vld [vmem:[%s754_s3] ss:$0 sm:$0xff]  ;;  %v667_v4 = vld [vmem:[%s753_s6 + $0x8] sm:$0xff] }
   0xa   :  { %505 = vmatprep.subr.bf16.mxu0 %v504_v9  ;;  %162 = vperm.xlu1 %532, %v156_v16   ;;  %v239_v34 = vshra.s32 %v652_v33, 16  ;;  %v438_v44 = vld [vmem:[%s755_s5] ss:$0 sm:$0xff]  ;;  %v252_v8 = vsel %vm200_vm0, %v667_v4, 2147483647  ;;  %v238_v21 = vand.u32 65535, %v652_v33 }
   0xb   :  { %v254_v13 = vshra.s32 %v252_v8, 16 }
   0xc   :  { %v655_v35 = vcvt.s32.f32 %v239_v34 }
   0xd   :  { %507 = vmatpush3.bf16.msra.mxu0 %v504_v9  ;;  %v256_v16 = vcvt.s32.f32 %v254_v13 }
   0xe   :  { %509 = vmatprep.subr.bf16.mxu0 %v508_v17 }
  0x11   :  { %511 = vmatpush3.bf16.msra.mxu0 %v508_v17 }
  0x12   :  { %513 = vmatprep.subr.bf16.mxu0 %v512_v20 }
  0x15   :  { %515 = vmatpush3.bf16.msra.mxu0 %v512_v20  ;;  %v253_v20 = vand.u32 65535, %v252_v8 }
  0x16   :  { %517 = vmatprep.subr.bf16.mxu0 %v516_v23 }
  0x17   :  { %v255_v28 = vcvt.s32.f32 %v253_v20 }
  0x19   :  { %519 = vmatpush3.bf16.msra.mxu0 %v516_v23 }
  0x1a   :  { %521 = vmatprep.subr.bf16.mxu0 %v520_v26 }
  0x1d   :  { %523 = vmatpush3.bf16.msra.mxu0 %v520_v26 }
  0x1e   :  { %525 = vmatprep.subr.bf16.mxu0 %v524_v29 }
  0x21   :  { %527 = vmatpush3.bf16.msra.mxu0 %v524_v29  ;;  %v240_v29 = vcvt.s32.f32 %v238_v21 }
  0x24   :  { %494 = vmatmul.mubr.f32.vlgmr.msra.gmra.mrb[0].mxu0 %v24_v30 }
  0x28   :  { %242 = vmin.xlane.f32.xlu0 %v655_v35 }
  0x84   :  { %v122_v37 = vpop.permute.xlu0 %121 }
  0x85   :  { %v160_v38 = vpop.permute.xlu1 %159  ;;  %v135_v50 = vadd.f32 %v437_v40, %v122_v37 }
  0x86   :  { %vm168_vm4 = vcmp.eq.s32.totalorder %v160_v38, %v438_v44 }
  0x87   :  { %vm172_vm6 = vmand %vm168_vm4, %vm170_vm3 }
  0x88   :  { %v127_v41 = vpop.permute.xlu0 %126  ;;  %v439_v59 = vsel %vm172_vm6, 1.0, %v535_v56 }
  0x89   :  { %v163_v45 = vpop.permute.xlu1 %162  ;;  %v136_v47 = vadd.f32 %v437_v40, %v127_v41 }
  0x8a   :  { %vm169_vm2 = vcmp.eq.s32.totalorder %v163_v45, %v438_v44 }
  0x8b   :  { %vm173_vm5 = vmand %vm169_vm2, %vm171_vm1 }
  0x8c   :  { %v440_v57 = vsel %vm173_vm5, 1.0, %v535_v56 }
  0xb5   :  { %v243_v17 = vpop.xlane.xlu0 %242 }
  0xb6   :  { %vm244_vm12 = vcmp.eq.f32.partialorder %v655_v35, %v243_v17  ;;  %v249_v36 = vcvt.f32.s32 %v243_v17 }
  0xb7   :  { %v245_v34 = vsel %vm244_vm12, %v240_v29, inf }
  0xb8   :  { %v250_v43 = vshll.u32 %v249_v36, 16 }
  0xf7   :  { %v495_v46 = vpop.f32.mrb[0].mxu0 }
  0xf8   :  { %v138_v48 = vmul.f32 2.0, %v495_v46  ;;  %v107_v49 = vpop.f32.mrb[1].mxu0 }
  0xf9   :  { %v137_v51 = vmul.f32 2.0, %v107_v49 }
  0xfa   :  { %v140_v52 = vsub.f32 %v136_v47, %v138_v48 }
  0xfb   :  { %v139_v53 = vsub.f32 %v135_v50, %v137_v51 }
  0xfc   :  { %v142_v54 = vmax.f32 %v140_v52, 0.0001 }
  0xfd   :  { %v141_v55 = vmax.f32 %v139_v53, 0.0001 }
  0xfe   :  { %vm179_vm7 = vcmp.lt.f32.partialorder %v142_v54, 0.25 }
  0xff   :  { %vm178_vm8 = vcmp.lt.f32.partialorder %v141_v55, 0.25  ;;  %v442_v58 = vsel %vm179_vm7, 1.0, %v535_v56 }
 0x100   :  { %v441_v60 = vsel %vm178_vm8, 1.0, %v535_v56  ;;  %v185_v61 = vadd.f32 %v442_v58, %v440_v57 }
 0x101   :  { %v184_v62 = vadd.f32 %v441_v60, %v439_v59 }
 0x102   :  { %v187_v63 = vmul.f32 1000000.0, %v185_v61 }
 0x103   :  { %v186_v0 = vmul.f32 1000000.0, %v184_v62 }
 0x104   :  { %v189_v1 = vadd.f32 %v187_v63, %v142_v54 }
 0x105   :  { %v188_v2 = vadd.f32 %v186_v0, %v141_v55 }
 0x106   :  { %v193_v3 = vand.u32 4294967280, %v189_v1 }
 0x107   :  { %v192_v5 = vand.u32 4294967280, %v188_v2 }
 0x108   :  { %v669_v6 = vor.u32 %v193_v3, %v151_v42 }
 0x109   :  { %v671_v7 = vor.u32 %v192_v5, %v151_v42 }
 0x10a   :  { %v221_v9 = vsel %vm205_vm9, %v669_v6, 2147483647 }
 0x10b   :  { %v223_v10 = vshra.s32 %v221_v9, 16  ;;  %v206_v11 = vsel %vm205_vm9, %v671_v7, 2147483647  ;;  %v222_v18 = vand.u32 65535, %v221_v9 }
 0x10c   :  { %v208_v12 = vshra.s32 %v206_v11, 16  ;;  %v207_v19 = vand.u32 65535, %v206_v11 }
 0x10d   :  { %v225_v14 = vcvt.s32.f32 %v223_v10  ;;  %v224_v23 = vcvt.s32.f32 %v222_v18 }
 0x10e   :  { %v210_v15 = vcvt.s32.f32 %v208_v12  ;;  %v209_v25 = vcvt.s32.f32 %v207_v19 }
 0x10f   :  { %226 = vmin.xlane.f32.xlu1 %v225_v14 }
 0x110   :  { %211 = vmin.xlane.f32.xlu0 %v210_v15 }
 0x114   :  { %257 = vmin.xlane.f32.xlu0 %v256_v16 }
 0x19c   :  { %v227_v22 = vpop.xlane.xlu1 %226 }
 0x19d   :  { %v212_v24 = vpop.xlane.xlu0 %211  ;;  %vm228_vm10 = vcmp.eq.f32.partialorder %v225_v14, %v227_v22  ;;  %v233_v37 = vcvt.f32.s32 %v227_v22 }
 0x19e   :  { %v229_v26 = vsel %vm228_vm10, %v224_v23, inf  ;;  %vm213_vm11 = vcmp.eq.f32.partialorder %v210_v15, %v212_v24  ;;  %v218_v39 = vcvt.f32.s32 %v212_v24 }
 0x19f   :  { %230 = vmin.xlane.f32.xlu0 %v229_v26  ;;  %v214_v27 = vsel %vm213_vm11, %v209_v25, inf  ;;  %v234_v44 = vshll.u32 %v233_v37, 16  ;;  %vm346_vm11 = vcmask 15368  }
 0x1a0   :  { %215 = vmin.xlane.f32.xlu1 %v214_v27  ;;  %v219_v47 = vshll.u32 %v218_v39, 16 }
 0x1a1   :  { %v258_v30 = vpop.xlane.xlu0 %257 }
 0x1a2   :  { %vm259_vm13 = vcmp.eq.f32.partialorder %v256_v16, %v258_v30  ;;  %v264_v40 = vcvt.f32.s32 %v258_v30 }
 0x1a3   :  { %v260_v31 = vsel %vm259_vm13, %v255_v28, inf }
 0x1a4   :  { %261 = vmin.xlane.f32.xlu0 %v260_v31  ;;  %246 = vmin.xlane.f32.xlu1 %v245_v34  ;;  %v265_v35 = vshll.u32 %v264_v40, 16 }
 0x22c   :  { %v231_v33 = vpop.xlane.xlu0 %230 }
 0x22d   :  { %v216_v38 = vpop.xlane.xlu1 %215  ;;  %v232_v41 = vcvt.f32.s32 %v231_v33 }
 0x22e   :  { %v217_v42 = vcvt.f32.s32 %v216_v38 }
 0x22f   :  { %v235_v50 = vadd.s32 %v234_v44, %v232_v41 }
 0x230   :  { %v220_v51 = vadd.s32 %v219_v47, %v217_v42 }
 0x231   :  { %v262_v45 = vpop.xlane.xlu0 %261  ;;  %v247_v46 = vpop.xlane.xlu1 %246 }
 0x232   :  { %v263_v48 = vcvt.f32.s32 %v262_v45  ;;  %v248_v49 = vcvt.f32.s32 %v247_v46 }
 0x234   :  { %v266_v52 = vadd.s32 %v265_v35, %v263_v48  ;;  %v251_v53 = vadd.s32 %v250_v43, %v248_v49 }
 0x236   :  { %vm269_vm15 = vcmp.lt.s32.totalorder %v235_v50, %v266_v52  ;;  %vm267_vm1 = vcmp.lt.s32.totalorder %v220_v51, %v251_v53 }
 0x237   :  { %v270_v54 = vsel %vm269_vm15, %v235_v50, %v266_v52  ;;  %v268_v55 = vsel %vm267_vm1, %v220_v51, %v251_v53 }
 0x238   :  { %273 = vst.msk [vmem:[%s753_s6 + $0x8] sm:$0xff] %vm271_vm14, %v270_v54  ;;  %272 = vst.msk [vmem:[%s753_s6] sm:$0xff] %vm271_vm14, %v268_v55  ;;  %vm275_vm2 = vcmp.eq.s32.totalorder %v669_v6, %v270_v54  ;;  %vm274_vm3 = vcmp.eq.s32.totalorder %v671_v7, %v268_v55  ;;  %vm279_vm4 = vcmp.eq.s32.totalorder %v667_v4, %v270_v54 }
 0x239   :  { %vm278_vm5 = vcmp.eq.s32.totalorder %v648_v32, %v268_v55  ;;  %v692_v56 = vsel %vm275_vm2, 2147483647, %v669_v6  ;;  %v695_v57 = vsel %vm274_vm3, 2147483647, %v671_v7  ;;  %v698_v58 = vsel %vm279_vm4, 2147483647, %v667_v4 }
 0x23a   :  { %v297_v59 = vsel %vm205_vm9, %v692_v56, 2147483647  ;;  %v282_v60 = vsel %vm205_vm9, %v695_v57, 2147483647  ;;  %v327_v61 = vsel %vm200_vm0, %v698_v58, 2147483647 }
 0x23b   :  { %v299_v62 = vshra.s32 %v297_v59, 16  ;;  %v284_v63 = vshra.s32 %v282_v60, 16  ;;  %v707_v0 = vsel %vm278_vm5, 2147483647, %v648_v32  ;;  %v329_v4 = vshra.s32 %v327_v61, 16 }
 0x23c   :  { %v312_v1 = vsel %vm200_vm0, %v707_v0, 2147483647  ;;  %v298_v8 = vand.u32 65535, %v297_v59  ;;  %v283_v9 = vand.u32 65535, %v282_v60  ;;  %v328_v13 = vand.u32 65535, %v327_v61 }
 0x23d   :  { %v301_v2 = vcvt.s32.f32 %v299_v62  ;;  %v286_v3 = vcvt.s32.f32 %v284_v63  ;;  %v314_v5 = vshra.s32 %v312_v1, 16  ;;  %v331_v6 = vcvt.s32.f32 %v329_v4 }
 0x23e   :  { %v300_v12 = vcvt.s32.f32 %v298_v8  ;;  %v285_v32 = vcvt.s32.f32 %v283_v9  ;;  %v313_v14 = vand.u32 65535, %v312_v1  ;;  %v330_v19 = vcvt.s32.f32 %v328_v13 }
 0x23f   :  { %302 = vmin.xlane.f32.xlu0 %v301_v2  ;;  %287 = vmin.xlane.f32.xlu1 %v286_v3  ;;  %v316_v7 = vcvt.s32.f32 %v314_v5 }
 0x240   :  { %v315_v20 = vcvt.s32.f32 %v313_v14 }
 0x243   :  { %332 = vmin.xlane.f32.xlu0 %v331_v6  ;;  %317 = vmin.xlane.f32.xlu1 %v316_v7 }
 0x2cc   :  { %v303_v10 = vpop.xlane.xlu0 %302  ;;  %v288_v11 = vpop.xlane.xlu1 %287 }
 0x2cd   :  { %vm304_vm6 = vcmp.eq.f32.partialorder %v301_v2, %v303_v10  ;;  %vm289_vm7 = vcmp.eq.f32.partialorder %v286_v3, %v288_v11  ;;  %v309_v23 = vcvt.f32.s32 %v303_v10  ;;  %v294_v24 = vcvt.f32.s32 %v288_v11 }
 0x2ce   :  { %v305_v15 = vsel %vm304_vm6, %v300_v12, inf  ;;  %v290_v16 = vsel %vm289_vm7, %v285_v32, inf  ;;  %vm421_vm6 = vcmask 23568  }
 0x2cf   :  { %306 = vmin.xlane.f32.xlu0 %v305_v15  ;;  %291 = vmin.xlane.f32.xlu1 %v290_v16  ;;  %v310_v31 = vshll.u32 %v309_v23, 16  ;;  %v295_v34 = vshll.u32 %v294_v24, 16 }
 0x2d0   :  { %v333_v17 = vpop.xlane.xlu0 %332  ;;  %v318_v18 = vpop.xlane.xlu1 %317 }
 0x2d1   :  { %vm334_vm8 = vcmp.eq.f32.partialorder %v331_v6, %v333_v17  ;;  %vm319_vm10 = vcmp.eq.f32.partialorder %v316_v7, %v318_v18  ;;  %v339_v27 = vcvt.f32.s32 %v333_v17  ;;  %v324_v28 = vcvt.f32.s32 %v318_v18 }
 0x2d2   :  { %v335_v21 = vsel %vm334_vm8, %v330_v19, inf  ;;  %v320_v22 = vsel %vm319_vm10, %v315_v20, inf }
 0x2d3   :  { %336 = vmin.xlane.f32.xlu0 %v335_v21  ;;  %321 = vmin.xlane.f32.xlu1 %v320_v22  ;;  %v340_v37 = vshll.u32 %v339_v27, 16  ;;  %v325_v38 = vshll.u32 %v324_v28, 16 }
 0x35c   :  { %v307_v25 = vpop.xlane.xlu0 %306  ;;  %v292_v26 = vpop.xlane.xlu1 %291 }
 0x35d   :  { %v308_v29 = vcvt.f32.s32 %v307_v25  ;;  %v293_v30 = vcvt.f32.s32 %v292_v26 }
 0x35f   :  { %v311_v41 = vadd.s32 %v310_v31, %v308_v29  ;;  %v296_v42 = vadd.s32 %v295_v34, %v293_v30 }
 0x360   :  { %v337_v33 = vpop.xlane.xlu0 %336  ;;  %v322_v36 = vpop.xlane.xlu1 %321 }
 0x361   :  { %v338_v39 = vcvt.f32.s32 %v337_v33  ;;  %v323_v40 = vcvt.f32.s32 %v322_v36 }
 0x363   :  { %v341_v43 = vadd.s32 %v340_v37, %v338_v39  ;;  %v326_v44 = vadd.s32 %v325_v38, %v323_v40 }
 0x365   :  { %vm344_vm12 = vcmp.lt.s32.totalorder %v311_v41, %v341_v43  ;;  %vm342_vm13 = vcmp.lt.s32.totalorder %v296_v42, %v326_v44 }
 0x366   :  { %v345_v45 = vsel %vm344_vm12, %v311_v41, %v341_v43  ;;  %v343_v46 = vsel %vm342_vm13, %v296_v42, %v326_v44 }
 0x367   :  { %348 = vst.msk [vmem:[%s753_s6 + $0x8] sm:$0xff] %vm346_vm11, %v345_v45  ;;  %347 = vst.msk [vmem:[%s753_s6] sm:$0xff] %vm346_vm11, %v343_v46  ;;  %vm350_vm14 = vcmp.eq.s32.totalorder %v692_v56, %v345_v45  ;;  %vm349_vm15 = vcmp.eq.s32.totalorder %v695_v57, %v343_v46  ;;  %vm354_vm1 = vcmp.eq.s32.totalorder %v698_v58, %v345_v45 }
 0x368   :  { %vm353_vm2 = vcmp.eq.s32.totalorder %v707_v0, %v343_v46  ;;  %v352_v47 = vsel %vm350_vm14, 2147483647, %v692_v56  ;;  %v351_v35 = vsel %vm349_vm15, 2147483647, %v695_v57  ;;  %v356_v48 = vsel %vm354_vm1, 2147483647, %v698_v58 }
 0x369   :  { %v372_v49 = vsel %vm205_vm9, %v352_v47, 2147483647  ;;  %v357_v50 = vsel %vm205_vm9, %v351_v35, 2147483647  ;;  %v402_v51 = vsel %vm200_vm0, %v356_v48, 2147483647 }
 0x36a   :  { %v374_v52 = vshra.s32 %v372_v49, 16  ;;  %v359_v53 = vshra.s32 %v357_v50, 16  ;;  %v355_v54 = vsel %vm353_vm2, 2147483647, %v707_v0  ;;  %v404_v61 = vshra.s32 %v402_v51, 16 }
 0x36b   :  { %v387_v55 = vsel %vm200_vm0, %v355_v54, 2147483647  ;;  %v373_v62 = vand.u32 65535, %v372_v49  ;;  %v358_v63 = vand.u32 65535, %v357_v50  ;;  %v403_v5 = vand.u32 65535, %v402_v51 }
 0x36c   :  { %v376_v59 = vcvt.s32.f32 %v374_v52  ;;  %v361_v60 = vcvt.s32.f32 %v359_v53  ;;  %v389_v56 = vshra.s32 %v387_v55, 16  ;;  %v406_v57 = vcvt.s32.f32 %v404_v61 }
 0x36d   :  { %v375_v3 = vcvt.s32.f32 %v373_v62  ;;  %v360_v4 = vcvt.s32.f32 %v358_v63  ;;  %v388_v0 = vand.u32 65535, %v387_v55  ;;  %v405_v10 = vcvt.s32.f32 %v403_v5 }
 0x36e   :  { %377 = vmin.xlane.f32.xlu0 %v376_v59  ;;  %362 = vmin.xlane.f32.xlu1 %v361_v60  ;;  %v391_v58 = vcvt.s32.f32 %v389_v56 }
 0x36f   :  { %v390_v11 = vcvt.s32.f32 %v388_v0 }
 0x372   :  { %407 = vmin.xlane.f32.xlu0 %v406_v57  ;;  %392 = vmin.xlane.f32.xlu1 %v391_v58 }
 0x3fb   :  { %v378_v1 = vpop.xlane.xlu0 %377  ;;  %v363_v2 = vpop.xlane.xlu1 %362 }
 0x3fc   :  { %vm379_vm9 = vcmp.eq.f32.partialorder %v376_v59, %v378_v1  ;;  %vm364_vm3 = vcmp.eq.f32.partialorder %v361_v60, %v363_v2  ;;  %v384_v13 = vcvt.f32.s32 %v378_v1  ;;  %v369_v14 = vcvt.f32.s32 %v363_v2 }
 0x3fd   :  { %v380_v6 = vsel %vm379_vm9, %v375_v3, inf  ;;  %v365_v7 = vsel %vm364_vm3, %v360_v4, inf }
 0x3fe   :  { %381 = vmin.xlane.f32.xlu0 %v380_v6  ;;  %366 = vmin.xlane.f32.xlu1 %v365_v7  ;;  %v385_v21 = vshll.u32 %v384_v13, 16  ;;  %v370_v22 = vshll.u32 %v369_v14, 16 }
 0x3ff   :  { %v408_v8 = vpop.xlane.xlu0 %407  ;;  %v393_v9 = vpop.xlane.xlu1 %392 }
 0x400   :  { %vm409_vm4 = vcmp.eq.f32.partialorder %v406_v57, %v408_v8  ;;  %vm394_vm5 = vcmp.eq.f32.partialorder %v391_v58, %v393_v9  ;;  %v414_v17 = vcvt.f32.s32 %v408_v8  ;;  %v399_v18 = vcvt.f32.s32 %v393_v9 }
 0x401   :  { %v410_v12 = vsel %vm409_vm4, %v405_v10, inf  ;;  %v395_v32 = vsel %vm394_vm5, %v390_v11, inf }
 0x402   :  { %411 = vmin.xlane.f32.xlu0 %v410_v12  ;;  %396 = vmin.xlane.f32.xlu1 %v395_v32  ;;  %v415_v25 = vshll.u32 %v414_v17, 16  ;;  %v400_v26 = vshll.u32 %v399_v18, 16 }
 0x48b   :  { %v382_v15 = vpop.xlane.xlu0 %381  ;;  %v367_v16 = vpop.xlane.xlu1 %366 }
 0x48c   :  { %v383_v19 = vcvt.f32.s32 %v382_v15  ;;  %v368_v20 = vcvt.f32.s32 %v367_v16 }
 0x48e   :  { %v386_v29 = vadd.s32 %v385_v21, %v383_v19  ;;  %v371_v30 = vadd.s32 %v370_v22, %v368_v20 }
 0x48f   :  { %v412_v23 = vpop.xlane.xlu0 %411  ;;  %v397_v24 = vpop.xlane.xlu1 %396 }
 0x490   :  { %v413_v27 = vcvt.f32.s32 %v412_v23  ;;  %v398_v28 = vcvt.f32.s32 %v397_v24 }
 0x492   :  { %v416_v31 = vadd.s32 %v415_v25, %v413_v27  ;;  %v401_v34 = vadd.s32 %v400_v26, %v398_v28 }
 0x494   :  { %vm419_vm7 = vcmp.lt.s32.totalorder %v386_v29, %v416_v31  ;;  %vm417_vm8 = vcmp.lt.s32.totalorder %v371_v30, %v401_v34 }
 0x495   :  { %v420_v33 = vsel %vm419_vm7, %v386_v29, %v416_v31  ;;  %v418_v36 = vsel %vm417_vm8, %v371_v30, %v401_v34 }
 0x496   :  { %423 = vst.msk [vmem:[%s753_s6 + $0x8] sm:$0xff] %vm421_vm6, %v420_v33  ;;  %422 = vst.msk [vmem:[%s753_s6] sm:$0xff] %vm421_vm6, %v418_v36 }
 0x49d   :  { %v428_v37 = vld [vmem:[%s753_s6 + $0x8] sm:$0xff]  ;;  %v427_v38 = vld [vmem:[%s753_s6] sm:$0xff] }
 0x49e   :  { %v430_v39 = vand.u32 15, %v428_v37  ;;  %v429_v40 = vand.u32 15, %v427_v38 }
 0x4a0   :  { %432 = vst.msk [vmem:[%s753_s6 + $0x8] sm:$0xff] %vm200_vm0, %v430_v39  ;;  %431 = vst.msk [vmem:[%s753_s6] sm:$0xff] %vm200_vm0, %v429_v40 }

</bundles_post_ra>
